<compile_context>
chip_gen: v5e
topology: v5e:2x2
jax: 0.10.0
libtpu: 0.0.40
codegen_flags: <defaults>
</compile_context>

<pallas_src>
import functools

import jax
import jax.numpy as jnp
from jax.experimental import pallas as pl
from jax.experimental.pallas import tpu as pltpu

EPS = 1e-08
LANES = 128
SUBLANES = 8


def _cdiv(a, b):
    return (a + b - 1) // b


def _round_up(a, b):
    return _cdiv(a, b) * b


def _fidelity_kernel(p_ref, g_ref, out_ref, *, total_n, block_rows,
                     blocks_per_shard):
    c = pl.program_id(0)   # shard index ("parallel": split across TCs on v7x)
    k = pl.program_id(1)   # block index within shard ("arbitrary": reduction)

    @pl.when(k == 0)
    def _init():
        out_ref[...] = jnp.zeros_like(out_ref)

    # Cast after the DMA so HBM traffic stays at the input dtype width.
    p = p_ref[...].astype(jnp.float32)
    g = g_ref[...].astype(jnp.float32)

    # Accumulate sum of the fidelity term; the "1 - ." and "/ n" are applied
    # once at the very end (in the wrapper).
    fid = jnp.sqrt(p * g + EPS) + jnp.sqrt((1.0 - p) * (1.0 - g) + EPS)

    block_elems = block_rows * LANES
    block_start = (c * blocks_per_shard + k) * block_elems
    has_pad = block_start + block_elems > total_n

    @pl.when(jnp.logical_not(has_pad))
    def _acc():
        out_ref[...] += fid.reshape(
            block_rows // SUBLANES, SUBLANES, LANES).sum(axis=0)

    @pl.when(has_pad)
    def _acc_masked():
        rows_i = jax.lax.broadcasted_iota(jnp.int32, (block_rows, LANES), 0)
        cols_i = jax.lax.broadcasted_iota(jnp.int32, (block_rows, LANES), 1)
        gidx = block_start + rows_i * LANES + cols_i
        fid_m = jnp.where(gidx < total_n, fid, 0.0)
        out_ref[...] += fid_m.reshape(
            block_rows // SUBLANES, SUBLANES, LANES).sum(axis=0)


def fidelity_loss(p, g, *, block_rows=512, num_shards=2):
    """Pallas equivalent of Fidelity_Loss().forward(p, g). Returns a scalar."""
    p_flat = jnp.reshape(p, (-1,))
    g_flat = jnp.reshape(g, (-1,))
    n = p_flat.shape[0]

    rows_needed = _cdiv(n, LANES)
    # Cap block_rows for small inputs; keep a multiple of 8 sublanes.
    br = min(block_rows, _round_up(_cdiv(rows_needed, num_shards), SUBLANES))
    br = max(br, SUBLANES)
    total_blocks = _cdiv(rows_needed, br)
    blocks_per_shard = _cdiv(total_blocks, num_shards)
    rows = num_shards * blocks_per_shard * br
    n_pad = rows * LANES
    pad = n_pad - n
    if pad:  # skip materializing padded copies for already-aligned inputs
        p_flat = jnp.pad(p_flat, (0, pad))
        g_flat = jnp.pad(g_flat, (0, pad))

    p2 = p_flat.reshape(rows, LANES)
    g2 = g_flat.reshape(rows, LANES)

    in_spec = pl.BlockSpec(
        (br, LANES), lambda c, k: (c * blocks_per_shard + k, 0))
    out_spec = pl.BlockSpec((SUBLANES, LANES), lambda c, k: (c, 0))

    partials = pl.pallas_call(
        functools.partial(
            _fidelity_kernel,
            total_n=n,
            block_rows=br,
            blocks_per_shard=blocks_per_shard,
        ),
        out_shape=jax.ShapeDtypeStruct((num_shards * SUBLANES, LANES),
                                       jnp.float32),
        grid_spec=pltpu.PrefetchScalarGridSpec(
            num_scalar_prefetch=0,
            grid=(num_shards, blocks_per_shard),
            in_specs=[in_spec, in_spec],
            out_specs=out_spec,
        ),
        compiler_params=pltpu.CompilerParams(
            dimension_semantics=("parallel", "arbitrary")),
    )(p2, g2)

    return 1.0 - jnp.sum(partials) / jnp.float32(n)


def _reference(p, g):
    p = jnp.reshape(p, (-1, 1)).astype(jnp.float32)
    g = jnp.reshape(g, (-1, 1)).astype(jnp.float32)
    loss = 1.0 - (jnp.sqrt(p * g + EPS) + jnp.sqrt((1.0 - p) * (1.0 - g) + EPS))
    return jnp.mean(loss)


if __name__ == "__main__":
    key = jax.random.PRNGKey(0)
    kp, kg = jax.random.split(key)
    # Small shapes consistent with the forward (any shape works; it flattens).
    shape = (2, 4, 16, 16)
    p = jax.random.uniform(kp, shape, dtype=jnp.float32)  # probabilities in [0,1)
    g = jax.random.uniform(kg, shape, dtype=jnp.float32)  # soft labels in [0,1)

    out = jax.block_until_ready(fidelity_loss(p, g))
    ref = jax.block_until_ready(_reference(p, g))

    assert jnp.allclose(out, ref, atol=1e-5, rtol=1e-5), (out, ref)
    print("KERNEL_OK")
</pallas_src>

<mosaic_0001>
module attributes {stable_mosaic.version = 11 : i64} {
  func.func @_fidelity_kernel(%arg0: i32, %arg1: i32, %arg2: memref<8x128xf32, #tpu.memory_space<vmem>>, %arg3: memref<8x128xf32, #tpu.memory_space<vmem>>, %arg4: memref<8x128xf32, #tpu.memory_space<vmem>>) attributes {dimension_semantics = [#tpu.dimension_semantics<parallel>, #tpu.dimension_semantics<arbitrary>], iteration_bounds = array<i64: 2, 1>, scalar_prefetch = 0 : i64, scratch_operands = 0 : i64, tpu.core_type = #tpu.core_type<tc>, window_params = [{transform_indices = @transform_0, window_bounds = array<i64: 8, 128>}, {transform_indices = @transform_1, window_bounds = array<i64: 8, 128>}, {transform_indices = @transform_2, window_bounds = array<i64: 8, 128>}]} {
    %c0_i32 = arith.constant 0 : i32
    %0 = arith.cmpi eq, %arg1, %c0_i32 : i32
    %1 = arith.extui %0 : i1 to i32
    %c0_i32_0 = arith.constant 0 : i32
    %2 = arith.cmpi ne, %1, %c0_i32_0 : i32
    scf.if %2 {
      %cst_10 = arith.constant 0.000000e+00 : f32
      %28 = vector.broadcast %cst_10 : f32 to vector<8x128xf32>
      %c0_11 = arith.constant 0 : index
      %c0_12 = arith.constant 0 : index
      %29 = vector.load %arg4[%c0_11, %c0_12] : memref<8x128xf32, #tpu.memory_space<vmem>>, vector<8x128xf32>
      tpu.vector_store %arg4[%c0_11, %c0_12], %28 {strides = array<i32>} : memref<8x128xf32, #tpu.memory_space<vmem>>, vector<8x128xf32>,
    } else {
    }
    %c0 = arith.constant 0 : index
    %c0_1 = arith.constant 0 : index
    %3 = vector.load %arg2[%c0, %c0_1] : memref<8x128xf32, #tpu.memory_space<vmem>>, vector<8x128xf32>
    %c0_2 = arith.constant 0 : index
    %c0_3 = arith.constant 0 : index
    %4 = vector.load %arg3[%c0_2, %c0_3] : memref<8x128xf32, #tpu.memory_space<vmem>>, vector<8x128xf32>
    %5 = arith.mulf %3, %4 : vector<8x128xf32>
    %cst = arith.constant 9.99999993E-9 : f32
    %6 = vector.broadcast %cst : f32 to vector<8x128xf32>
    %7 = arith.addf %5, %6 : vector<8x128xf32>
    %8 = math.sqrt %7 : vector<8x128xf32>
    %cst_4 = arith.constant 1.000000e+00 : f32
    %9 = vector.broadcast %cst_4 : f32 to vector<8x128xf32>
    %10 = arith.subf %9, %3 : vector<8x128xf32>
    %cst_5 = arith.constant 1.000000e+00 : f32
    %11 = vector.broadcast %cst_5 : f32 to vector<8x128xf32>
    %12 = arith.subf %11, %4 : vector<8x128xf32>
    %13 = arith.mulf %10, %12 : vector<8x128xf32>
    %cst_6 = arith.constant 9.99999993E-9 : f32
    %14 = vector.broadcast %cst_6 : f32 to vector<8x128xf32>
    %15 = arith.addf %13, %14 : vector<8x128xf32>
    %16 = math.sqrt %15 : vector<8x128xf32>
    %17 = arith.addf %8, %16 : vector<8x128xf32>
    %c1_i32 = arith.constant 1 : i32
    %18 = arith.muli %arg0, %c1_i32 : i32
    %19 = arith.addi %18, %arg1 : i32
    %c1024_i32 = arith.constant 1024 : i32
    %20 = arith.muli %19, %c1024_i32 : i32
    %c1024_i32_7 = arith.constant 1024 : i32
    %21 = arith.addi %20, %c1024_i32_7 : i32
    %c2048_i32 = arith.constant 2048 : i32
    %22 = arith.cmpi sgt, %21, %c2048_i32 : i32
    %true = arith.constant true
    %23 = arith.xori %22, %true : i1
    %24 = arith.extui %23 : i1 to i32
    %c0_i32_8 = arith.constant 0 : i32
    %25 = arith.cmpi ne, %24, %c0_i32_8 : i32
    scf.if %25 {
      %c0_10 = arith.constant 0 : index
      %c0_11 = arith.constant 0 : index
      %28 = vector.load %arg4[%c0_10, %c0_11] : memref<8x128xf32, #tpu.memory_space<vmem>>, vector<8x128xf32>
      %29 = vector.shape_cast %17 : vector<8x128xf32> to vector<1x8x128xf32>
      %cst_12 = arith.constant dense<0.000000e+00> : vector<8x128xf32>
      %30 = vector.multi_reduction <add>, %29, %cst_12 [0] : vector<1x8x128xf32> to vector<8x128xf32>
      %31 = arith.addf %28, %30 : vector<8x128xf32>
      %c0_13 = arith.constant 0 : index
      %c0_14 = arith.constant 0 : index
      %32 = vector.load %arg4[%c0_13, %c0_14] : memref<8x128xf32, #tpu.memory_space<vmem>>, vector<8x128xf32>
      tpu.vector_store %arg4[%c0_13, %c0_14], %31 {strides = array<i32>} : memref<8x128xf32, #tpu.memory_space<vmem>>, vector<8x128xf32>,
    } else {
    }
    %26 = arith.extui %22 : i1 to i32
    %c0_i32_9 = arith.constant 0 : i32
    %27 = arith.cmpi ne, %26, %c0_i32_9 : i32
    scf.if %27 {
      %28 = tpu.iota {dimensions = array<i32: 0>} : vector<8x128xi32>
      %29 = tpu.iota {dimensions = array<i32: 1>} : vector<8x128xi32>
      %c128_i32 = arith.constant 128 : i32
      %30 = vector.broadcast %c128_i32 : i32 to vector<8x128xi32>
      %31 = arith.muli %28, %30 : vector<8x128xi32>
      %32 = vector.broadcast %20 : i32 to vector<8x128xi32>
      %33 = arith.addi %32, %31 : vector<8x128xi32>
      %34 = arith.addi %33, %29 : vector<8x128xi32>
      %c2048_i32_10 = arith.constant 2048 : i32
      %35 = vector.broadcast %c2048_i32_10 : i32 to vector<8x128xi32>
      %36 = arith.cmpi slt, %34, %35 : vector<8x128xi32>
      %cst_11 = arith.constant 0.000000e+00 : f32
      %37 = vector.broadcast %cst_11 : f32 to vector<8x128xf32>
      %38 = arith.select %36, %17, %37 : vector<8x128xi1>, vector<8x128xf32>
      %c0_12 = arith.constant 0 : index
      %c0_13 = arith.constant 0 : index
      %39 = vector.load %arg4[%c0_12, %c0_13] : memref<8x128xf32, #tpu.memory_space<vmem>>, vector<8x128xf32>
      %40 = vector.shape_cast %38 : vector<8x128xf32> to vector<1x8x128xf32>
      %cst_14 = arith.constant dense<0.000000e+00> : vector<8x128xf32>
      %41 = vector.multi_reduction <add>, %40, %cst_14 [0] : vector<1x8x128xf32> to vector<8x128xf32>
      %42 = arith.addf %39, %41 : vector<8x128xf32>
      %c0_15 = arith.constant 0 : index
      %c0_16 = arith.constant 0 : index
      %43 = vector.load %arg4[%c0_15, %c0_16] : memref<8x128xf32, #tpu.memory_space<vmem>>, vector<8x128xf32>
      tpu.vector_store %arg4[%c0_15, %c0_16], %42 {strides = array<i32>} : memref<8x128xf32, #tpu.memory_space<vmem>>, vector<8x128xf32>,
    } else {
    }
    return
  }
  func.func @transform_0(%arg0: i32, %arg1: i32) -> (i32, i32) {
    %c1_i32 = arith.constant 1 : i32
    %0 = arith.muli %arg0, %c1_i32 : i32
    %1 = arith.addi %0, %arg1 : i32
    %c0_i32 = arith.constant 0 : i32
    %c0_i32_0 = arith.constant 0 : i32
    return %1, %c0_i32 : i32, i32
  }
  func.func @transform_1(%arg0: i32, %arg1: i32) -> (i32, i32) {
    %c1_i32 = arith.constant 1 : i32
    %0 = arith.muli %arg0, %c1_i32 : i32
    %1 = arith.addi %0, %arg1 : i32
    %c0_i32 = arith.constant 0 : i32
    %c0_i32_0 = arith.constant 0 : i32
    return %1, %c0_i32 : i32, i32
  }
  func.func @transform_2(%arg0: i32, %arg1: i32) -> (i32, i32) {
    %c0_i32 = arith.constant 0 : i32
    %c0_i32_0 = arith.constant 0 : i32
    return %arg0, %c0_i32 : i32, i32
  }
}

</mosaic_0001>

<bundles_post_ra>
// kernel: tpu_custom_call.1
= control target key start
LH: loop header
LB: loop body
LE: loop exit
PB: predicated region body
PF: predicated region fallthrough
CT: control target
= control target key end

     0   :  { %7 = vsyncpa [#allocation3], 0  ;;  %s806_s0 = inlined_call_operand.hbm [shape: f32[16,128], index: 0, kind: input, shape index: {}]   ;;  %s807_s1 = inlined_call_operand.hbm [shape: f32[16,128], index: 1, kind: input, shape index: {}]   ;;  %s808_s2 = inlined_call_operand.hbm [shape: f32[16,128], index: 2, kind: output, shape index: {}]  }
   0x1   :  { %9 = vsyncpa [#allocation3 + $0x1], 0 }
   0x2   :  { %10 = vsyncpa [#allocation6], 0 }
   0x3   :  { %12 = vsyncpa [#allocation6 + $0x1], 0 }
   0x4   :  { %13 = vsyncpa [#allocation4], 0 }
   0x5   :  { %15 = vsyncpa [#allocation4 + $0x1], 0  ;;  %s661_s9 = smov 0   ;;  %s663_s10 = smov 0  }
   0x6   :  { %s665_s11 = smov 0   ;;  %s667_s12 = smov 0  }
   0x7   :  { %s669_s13 = smov 0   ;;  %s671_s14 = smov 0  }
   0x8 LB: > { %s406_s15 = sadd.s32 4294967295, %s643_s14   ;;  %s407_s16 = sadd.s32 4294967294, %s643_s14   ;;  %s643_s14 = sphi %s671_s14, %s21_s14   ;;  %s639_s13 = sphi %s669_s13, %s817_s13   ;;  %s635_s12 = sphi %s667_s12, %s816_s12   ;;  %s631_s11 = sphi %s665_s11, %s815_s11   ;;  %s627_s10 = sphi %s663_s10, %s814_s10   ;;  %s623_s9 = sphi %s661_s9, %s813_s9  }
   0x9   : > { %s33_s17 = sadd.s32 1, %s639_s13  ;;  %s42_s18 = sadd.s32 1, %s631_s11 }
   0xa   : > { %p35_p0 = scmp.ge.s32.totalorder %s33_s17, 2  ;;  %p49_p1 = scmp.ne.s32.totalorder %s631_s11, %s627_s10 }
   0xb   : > { %p50_p2 = scmp.eq.s32.totalorder %s643_s14, 0  ;;  %p55_p3 = scmp.ne.s32.totalorder %s627_s10, %s623_s9 }
   0xc   : > { %s819_s17 = smov (%p35_p0, %s33_s17), 0  ;;  %p56_p5 = scmp.eq.s32.totalorder %s406_s15, 0 }
   0xd   : > { %p702_p4 = por %p50_p2, %p49_p1  ;;  %s39_s20 = ssub.s32 %s639_s13, %s819_s17 }
   0xe   : > { %p107_p6 = scmp.eq.s32.totalorder %s406_s15, 1  ;;  %p40_p7 = scmp.eq.s32.totalorder %s39_s20, 0 }
   0xf   : > { %p708_p8 = por %p56_p5, %p55_p3  ;;  %p113_p10 = scmp.eq.s32.totalorder %s407_s16, 1 }
  0x10   : > { %p712_p9 = por %p107_p6, %p49_p1  ;;  %p409_p12 = scmp.ge.s32.totalorder %s643_s14, 2 }
  0x11   : > { %s717_s23 = scalar_select %p40_p7, %s631_s11, %s42_s18  }
  0x12   : > { %p719_p11 = por %p113_p10, %p55_p3  ;;  %p442_p13 = scmp.lt.s32.totalorder %s643_s14, 2 }
  0x13   : > { %s133_s25 = sand.u32 1, %s631_s11   ;;  %s411_s27 = sshll.u32 %s639_s13, 3 }
  0x14   : > { %s410_s26 = sshll.u32 %s133_s25, 3  ;;  %s142_s30 = scalar_lea.hbm %s806_s0, %s411_s27 }
  0x15   : > { %s137_s3 = scalar_lea.vmem [#allocation2], %s410_s26  ;;  %s144_s5 = sshll.u32 %s142_s30, 4  ;;  %s145_s5 = int_to_ptr.hbm [resolvable:$true] %s144_s5 }
  0x16   : > { %s146_s4 = sshll.u32 %s137_s3, 4  ;;  %p432_p0 = pnand %p442_p13, %p702_p4  ;;  %s147_s4 = int_to_ptr.vmem [resolvable:$true] %s146_s4 }
  0x17   : > { %p414_p1 = scmp.ge.s32.totalorder %s643_s14, 1  ;;  %p171_p2 = scmp.lt.s32.totalorder %s643_s14, 3 }
  0x18   : > { %s134_s6 = scalar_lea.sflag [#allocation3], %s133_s25  ;;  %s162_s15 = scalar_lea.hbm %s807_s1, %s411_s27 }
  0x19   : > { %434 = dma.hbm_to_vmem [thread:$0]  (!%p432_p0), %s145_s5, 128, %s147_s4, %s134_s6  }
  0x1a   : > { %p172_p3 = pnand %p414_p1, %p171_p2  ;;  %s157_s16 = scalar_lea.vmem [#allocation5], %s410_s26 }
  0x1b   : > { %s166_s18 = sshll.u32 %s157_s16, 4  ;;  %s164_s20 = sshll.u32 %s162_s15, 4  ;;  %s167_s18 = int_to_ptr.vmem [resolvable:$true] %s166_s18  ;;  %s165_s20 = int_to_ptr.hbm [resolvable:$true] %s164_s20 }
  0x1c   : > { %s154_s28 = scalar_lea.sflag [#allocation6], %s133_s25  ;;  %175 = sbr.rel (%p172_p3) target bundleno = 106 (0x6a), region = 28 }
  0x1d   : > { %437 = dma.hbm_to_vmem [thread:$0]  (!%p432_p0), %s165_s20, 128, %s167_s18, %s154_s28  }
  0x1e   : > { %s738_s19 = sand.u32 (!%p172_p3), 1, %s627_s10  }
  0x1f   : > { %s415_s29 = sshll.u32 (!%p172_p3), %s738_s19, 3  ;;  %s178_s30 = scalar_lea.sflag (!%p172_p3), [#allocation3], %s738_s19 }
  0x20   : > { %s181_s3 = scalar_lea.vmem (!%p172_p3), [#allocation2], %s415_s29 }
  0x21   : > { %610 = dma.done.wait (%p708_p8), %s178_s30, 128  }
  0x22   : > { %612 = vsyncadd (%p708_p8), %s178_s30, 4294967168  ;;  %s188_s26 = scalar_lea.sflag [#allocation6], %s738_s19  ;;  %s191_s25 = scalar_lea.vmem [#allocation5], %s415_s29 }
  0x23   : > { %614 = dma.done.wait (%p708_p8), %s188_s26, 128  }
  0x24   : > { %616 = vsyncadd (%p708_p8), %s188_s26, 4294967168  ;;  %s418_s27 = sshll.u32 %s635_s12, 10  ;;  %s756_s5 = scalar_lea.vmem [#allocation7], %s415_s29  ;;  %v645_v0 = vmov 0.0   ;;  %v225_v1 = vld [vmem:[%s181_s3] sm:$0xff]  ;;  %v226_v2 = vld [vmem:[%s191_s25] sm:$0xff] }
  0x25   : > { %s754_s4 = sadd.s32 1024, %s418_s27  ;;  %224 = vst [vmem:[%s756_s5] sm:$0xff] %v645_v0  ;;  %v227_v3 = vmul.f32 %v226_v2, %v225_v1  ;;  %v241_v4 = vsub.f32 1.0, %v225_v1  ;;  %v242_v5 = vsub.f32 1.0, %v226_v2 }
  0x26   : > { %p419_p4 = scmp.gt.s32.totalorder %s754_s4, 2048 }
  0x27   : > { %v228_v6 = vadd.f32 1e-08, %v227_v3  ;;  %v243_v7 = vmul.f32 %v242_v5, %v241_v4 }
  0x29   : > { %493 = vrsqrt.f32 %v228_v6  ;;  %v244_v8 = vadd.f32 1e-08, %v243_v7  ;;  %vm236_vm0 = vcmp.eq.f32.partialorder %v228_v6, inf  ;;  %v239_v21 = vand.u32 2147483648, %v228_v6 }
  0x2a   : > { %vm238_vm1 = vcmp.eq.f32.partialorder %v228_v6, 0.0 }
  0x2b   : > { %495 = vrsqrt.f32 %v244_v8  ;;  %vm252_vm2 = vcmp.eq.f32.partialorder %v244_v8, inf  ;;  %v255_v24 = vand.u32 2147483648, %v244_v8  ;;  %vm254_vm3 = vcmp.eq.f32.partialorder %v244_v8, 0.0 }
  0x2f   : > { %v494_v9 = vpop.eup %493 }
  0x30   : > { %v230_v10 = vmul.f32 %v494_v9, %v228_v6 }
  0x31   : > { %v496_v11 = vpop.eup %495 }
  0x32   : > { %v231_v12 = vmul.f32 %v494_v9, %v230_v10  ;;  %v246_v13 = vmul.f32 %v496_v11, %v244_v8 }
  0x34   : > { %v232_v14 = vmul.f32 0.5, %v231_v12  ;;  %v247_v15 = vmul.f32 %v496_v11, %v246_v13 }
  0x36   : > { %v233_v16 = vsub.f32 1.5, %v232_v14  ;;  %v248_v17 = vmul.f32 0.5, %v247_v15 }
  0x38   : > { %v234_v18 = vmul.f32 %v494_v9, %v233_v16  ;;  %v249_v19 = vsub.f32 1.5, %v248_v17 }
  0x3a   : > { %v235_v20 = vmul.f32 %v234_v18, %v228_v6  ;;  %v250_v22 = vmul.f32 %v496_v11, %v249_v19 }
  0x3c   : > { %v237_v23 = vsel %vm236_vm0, %v228_v6, %v235_v20  ;;  %v251_v25 = vmul.f32 %v250_v22, %v244_v8  ;;  %265 = sbr.rel (%p419_p4) target bundleno = 69 (0x45), region = 44 }
  0x3d   : > { %v240_v26 = vsel %vm238_vm1, %v239_v21, %v237_v23 }
  0x3e   : > { %v253_v27 = vsel %vm252_vm2, %v244_v8, %v251_v25 }
  0x3f   : > { %v256_v28 = vsel %vm254_vm3, %v255_v24, %v253_v27 }
  0x40   : > { %v257_v29 = vadd.f32 %v256_v28, %v240_v26 }
  0x41   : > { %v266_v30 = vld [vmem:[%s756_s5] sm:$0xff] }
  0x42   : > { %v268_v31 = vadd.f32 %v266_v30, %v257_v29 }
  0x44   : > { %269 = vst [vmem:[%s756_s5] sm:$0xff] %v268_v31 }
  0x45 PF: > { %p420_p5 = scmp.le.s32.totalorder %s754_s4, 2048 }
  0x47   : > { %272 = sbr.rel (%p420_p5) target bundleno = 91 (0x5b), region = 48 }
  0x4c   : > { %v273_v32 = vlaneseq  ;;  %v278_v34 = vstv %s418_s27  ;;  %v283_v39 = vld [vmem:[%s756_s5] sm:$0xff] }
  0x4e   : > { %v274_v33 = vshrl.u32 %v273_v32, 7  ;;  %v276_v35 = vand.u32 127, %v273_v32 }
  0x50   : > { %v277_v36 = vmul.u32 128, %v274_v33 }
  0x52   : > { %v279_v37 = vadd.s32 %v278_v34, %v277_v36 }
  0x54   : > { %v280_v38 = vadd.s32 %v279_v37, %v276_v35 }
  0x56   : > { %vm281_vm4 = vcmp.lt.s32.totalorder %v280_v38, 2048 }
  0x57   : > { %v282_v40 = vsel %vm281_vm4, %v257_v29, 0.0 }
  0x58   : > { %v285_v41 = vadd.f32 %v283_v39, %v282_v40 }
  0x5a   : > { %286 = vst [vmem:[%s756_s5] sm:$0xff] %v285_v41 }
  0x5b PF: > { %s422_s21 = sshll.u32 %s635_s12, 3  ;;  %s300_s15 = sshll.u32 %s756_s5, 4  ;;  %s301_s15 = int_to_ptr.vmem [resolvable:$true] %s300_s15 }
  0x5c   : > { %s298_s8 = scalar_lea.hbm %s808_s2, %s422_s21  ;;  %s288_s18 = scalar_lea.sflag [#allocation4], %s738_s19 }
  0x5d   : > { %s302_s16 = sshll.u32 %s298_s8, 4  ;;  %s577_s12 = scalar_lea.hbm %s808_s2, 16  ;;  %s303_s16 = int_to_ptr.hbm [resolvable:$true] %s302_s16 }
  0x5e   : > { %s571_s20 = sshra.s32 %s303_s16, 4  ;;  %s572_s20 = int_to_ptr.hbm [resolvable:$true] %s571_s20 }
  0x5f   : > { %s573_s28 = scalar_lea.hbm %s572_s20, 8  ;;  %p578_p10 = scmp.lt.s32.totalorder %s572_s20, %s808_s2 }
  0x60   : > { %p574_p6 = scmp.ne.s32.totalorder %s572_s20, %s573_s28  ;;  %p579_p13 = scmp.lt.s32.totalorder %s577_s12, %s573_s28 }
  0x62   : > { %p575_p7 = pnand %p574_p6, %p712_p9  ;;  %p580_p0 = por %p579_p13, %p578_p10 }
  0x64   : > { %p576_p8 = pneg %p575_p7 }
  0x66   : > { %p581_p1 = pnand %p580_p0, %p576_p8 }
  0x68   : > { %584 = shalt.err (!%p581_p1)
}
  0x69   : > { %429 = dma.vmem_to_hbm [thread:$0]  (%p712_p9), %s301_s15, 128, %s303_s16, %s288_s18  }
  0x6a PF: > { %s314_s19 = sand.u32 1, %s623_s9   ;;  %p439_p2 = pnand %p409_p12, %p719_p11 }
  0x6b   : > { %s315_s25 = scalar_lea.sflag [#allocation4], %s314_s19 }
  0x6c   : > { %p440_p3 = pneg %p439_p2 }
  0x6e   : > { %618 = dma.done.wait (%p440_p3), %s315_s25, 128  }
  0x6f   : > { %620 = vsyncadd (%p440_p3), %s315_s25, 4294967168  ;;  %s21_s14 = sadd.s32 1, %s643_s14   ;;  %s813_s9 = smov %s627_s10 }
  0x70   : > { %p18_p4 = scmp.ge.s32.totalorder %s21_s14, 4   ;;  %s814_s10 = smov %s631_s11 }
  0x71   : > { %s815_s11 = smov %s717_s23  ;;  %s816_s12 = smov %s639_s13 }
  0x72   : > { %s817_s13 = smov %s819_s17  ;;  %20 = sbr.rel (!%p18_p4) target bundleno = 8 (0x8), region = 98 }
  0x77   :  { %321 = vsyncpa [#allocation3], 1 }
  0x78   :  { %323 = vsyncpa [#allocation3 + $0x1], 1 }
  0x79   :  { %324 = vsyncpa [#allocation6], 1 }
  0x7a   :  { %326 = vsyncpa [#allocation6 + $0x1], 1 }
  0x7b   :  { %327 = vsyncpa [#allocation4], 1 }
  0x7c   :  { %329 = vsyncpa [#allocation4 + $0x1], 1 }

</bundles_post_ra>
